<compile_context>
chip_gen: v6e
topology: v6e:2x2x1
jax: 0.10.0
libtpu: 0.0.40
codegen_flags: <defaults>
</compile_context>

<pallas_src>
import functools

import jax
import jax.numpy as jnp
from jax.experimental import pallas as pl
from jax.experimental.pallas import tpu as pltpu


def _round_up(x, m):
    return (x + m - 1) // m * m


def _vmem_capacity_bytes():
    """Physical per-core VMEM; fall back to the smallest generation (v7x)."""
    try:
        return int(pltpu.get_tpu_info().vmem_capacity_bytes)
    except Exception:
        return 64 << 20


def _se_kernel(x_ref, w1t_ref, w2t_ref, o_ref):
    """One batch tile of the SE gate.

    x_ref  : (TB, Cp)  activations, channels last (lane-dense)
    w1t_ref: (Cp, Hp)  fc1 weight, pre-transposed to (in, out) -- VMEM resident
    w2t_ref: (Hp, Cp)  fc2 weight, pre-transposed to (in, out) -- VMEM resident
    o_ref  : (TB, Cp)  gated output
    """
    # fc1 (bias-free) + ReLU.  Weight already (in, out): MXU eats it as stored.
    h = jnp.dot(x_ref[...], w1t_ref[...], preferred_element_type=jnp.float32)
    h = jnp.maximum(h, 0.0)

    # fc2 (bias-free).
    v = jnp.dot(h.astype(w2t_ref.dtype), w2t_ref[...],
                preferred_element_type=jnp.float32)

    # Exact sigmoid with a single EUP transcendental (tanh identity).
    s = 0.5 * jnp.tanh(0.5 * v) + 0.5

    # Channel-wise rescale.  Re-read x from VMEM here (cheap vld) instead of
    # keeping the whole tile live across both matmuls -> no vreg spills.
    o_ref[...] = (x_ref[...].astype(jnp.float32) * s).astype(o_ref.dtype)


@functools.partial(jax.jit, static_argnames=("max_batch_tile",))
def se_block(x, w1, w2, *, max_batch_tile=1024):
    """SEBlock forward.

    x : (B, C, 1, 1)  (the module's x.view(b, c) requires H == W == 1)
    w1: (C//r, C)     nn.Linear weight layout (out_features, in_features)
    w2: (C, C//r)
    Returns (B, C, 1, 1), same dtype as x.
    """
    b, c, hh, ww = x.shape
    assert hh == 1 and ww == 1, "SEBlock.forward requires H == W == 1 (x.view(b, c))"
    hid = w1.shape[0]
    assert w1.shape == (hid, c) and w2.shape == (c, hid)

    x2d = x.reshape(b, c)

    x_item = jnp.dtype(x.dtype).itemsize
    w_item = jnp.dtype(w1.dtype).itemsize
    sublane = max(8, 32 // x_item)           # 8 for f32, 16 for bf16

    c_pad = _round_up(c, 128)                # lane-dense channels
    hid_pad = _round_up(hid, 128)            # lane-dense hidden dim

    # ---- one-time weight transpose (+ pad only when needed) ----------------
    w1t = jnp.transpose(w1)                  # (C, Hd)
    w2t = jnp.transpose(w2)                  # (Hd, C)
    if c_pad != c or hid_pad != hid:
        w1t = jnp.pad(w1t, ((0, c_pad - c), (0, hid_pad - hid)))
        w2t = jnp.pad(w2t, ((0, hid_pad - hid), (0, c_pad - c)))

    # ---- batch tiling (generation-aware VMEM budget) ------------------------
    vmem_cap = _vmem_capacity_bytes()
    budget = int(vmem_cap * 0.7)

    # Single-buffered resident weights.
    w_bytes = 2 * c_pad * hid_pad * w_item
    # Per batch-row VMEM: double-buffered x + out tiles, plus ~3 f32
    # intermediates (h, v, s) worth of live values / spill space.
    per_row = 4 * c_pad * x_item + 3 * 4 * max(c_pad, hid_pad)
    tb_cap = max(sublane, (budget - w_bytes) // per_row)
    tb_cap = int(min(tb_cap, max_batch_tile))

    # Number of grid steps first, then the tile: batch padding stays at most a
    # few sublane rows.  Force >=2 steps when the batch allows, so v7x's two
    # TensorCores both get work (harmless extra ~0.35us on v5e/v6e).
    n_steps = pl.cdiv(b, tb_cap)
    if n_steps == 1 and b > 2 * sublane:
        n_steps = 2
    tb = _round_up(pl.cdiv(b, n_steps), sublane)
    n_steps = pl.cdiv(b, tb)
    b_pad = n_steps * tb

    # ---- activation padding only when actually required --------------------
    need_pad = (b_pad != b) or (c_pad != c)
    x_in = jnp.pad(x2d, ((0, b_pad - b), (0, c_pad - c))) if need_pad else x2d

    vmem_bytes = (4 * tb * c_pad * x_item              # x + out tiles, 2 bufs
                  + w_bytes                            # resident weights (x1)
                  + 3 * 4 * tb * max(c_pad, hid_pad)   # f32 intermediates
                  + (2 << 20))                         # slack
    vmem_bytes = int(min(max(vmem_bytes, 4 << 20), int(vmem_cap * 0.9)))

    cost = pl.CostEstimate(
        flops=4 * b_pad * c_pad * hid_pad + 2 * b_pad * c_pad,
        transcendentals=b_pad * c_pad,
        bytes_accessed=2 * b_pad * c_pad * x_item + w_bytes,
    )

    out_p = pl.pallas_call(
        _se_kernel,
        out_shape=jax.ShapeDtypeStruct((b_pad, c_pad), x.dtype),
        grid_spec=pltpu.PrefetchScalarGridSpec(
            num_scalar_prefetch=0,
            grid=(n_steps,),
            in_specs=[
                # x: streamed / double-buffered along the batch grid axis.
                pl.BlockSpec((tb, c_pad), lambda i: (i, 0)),
                # weights: same block every step -> DMA'd once; single buffer.
                pl.BlockSpec((c_pad, hid_pad), lambda i: (0, 0),
                             pipeline_mode=pl.Buffered(1)),
                pl.BlockSpec((hid_pad, c_pad), lambda i: (0, 0),
                             pipeline_mode=pl.Buffered(1)),
            ],
            out_specs=pl.BlockSpec((tb, c_pad), lambda i: (i, 0)),
        ),
        compiler_params=pltpu.CompilerParams(
            dimension_semantics=("parallel",),
            vmem_limit_bytes=vmem_bytes,
        ),
        cost_estimate=cost,
        # Output has identical (padded) shape/dtype as x -> reuse its buffer.
        input_output_aliases={0: 0},
    )(x_in, w1t, w2t)

    if need_pad:
        out_p = out_p[:b, :c]
    return out_p.reshape(b, c, 1, 1)


if __name__ == "__main__":
    # Small shapes consistent with the module's forward (spatial dims must be
    # 1x1 for x.view(b, c)).  At this size the kernel is pure launch/DMA
    # overhead; in production, stack many SE gates along batch into one call.
    B, C, RATIO = 2, 32, 4
    HIDDEN = C // RATIO

    key = jax.random.PRNGKey(0)
    kx, kw1, kw2 = jax.random.split(key, 3)

    x = jax.random.normal(kx, (B, C, 1, 1), dtype=jnp.float32)
    # nn.Linear layout: (out_features, in_features), bias-free.
    w1 = jax.random.normal(kw1, (HIDDEN, C), dtype=jnp.float32) * 0.1
    w2 = jax.random.normal(kw2, (C, HIDDEN), dtype=jnp.float32) * 0.1

    out = jax.block_until_ready(se_block(x, w1, w2))

    # Pure-JAX reference of the same math (exact sigmoid now -> tight tol).
    x2d = x.reshape(B, C)
    v = jnp.maximum(x2d @ w1.T, 0.0) @ w2.T
    ref = (x2d * jax.nn.sigmoid(v)).reshape(B, C, 1, 1)

    assert out.shape == (B, C, 1, 1) and out.dtype == x.dtype
    err = float(jnp.max(jnp.abs(out - ref)))
    assert jnp.allclose(out, ref, atol=1e-3, rtol=1e-3), f"max abs err {err}"

    print("KERNEL_OK")
</pallas_src>

<mosaic_0001>
module attributes {stable_mosaic.version = 11 : i64} {
  func.func @_se_kernel(%arg0: i32, %arg1: memref<8x128xf32, #tpu.memory_space<vmem>>, %arg2: memref<128x128xf32, #tpu.memory_space<vmem>>, %arg3: memref<128x128xf32, #tpu.memory_space<vmem>>, %arg4: memref<8x128xf32, #tpu.memory_space<vmem>>) attributes {dimension_semantics = [#tpu.dimension_semantics<parallel>], iteration_bounds = array<i64: 1>, scalar_prefetch = 0 : i64, scratch_operands = 0 : i64, tpu.core_type = #tpu.core_type<tc>, window_params = [{transform_indices = @transform_0, window_bounds = array<i64: 8, 128>}, {pipeline_mode = #tpu.pipeline_mode<synchronous>, transform_indices = @transform_1, window_bounds = array<i64: 128, 128>}, {pipeline_mode = #tpu.pipeline_mode<synchronous>, transform_indices = @transform_2, window_bounds = array<i64: 128, 128>}, {transform_indices = @transform_3, window_bounds = array<i64: 8, 128>}]} {
    %c0 = arith.constant 0 : index
    %c0_0 = arith.constant 0 : index
    %0 = vector.load %arg1[%c0, %c0_0] : memref<8x128xf32, #tpu.memory_space<vmem>>, vector<8x128xf32>
    %c0_1 = arith.constant 0 : index
    %c0_2 = arith.constant 0 : index
    %1 = vector.load %arg2[%c0_1, %c0_2] : memref<128x128xf32, #tpu.memory_space<vmem>>, vector<128x128xf32>
    %cst = arith.constant dense<0.000000e+00> : vector<8x128xf32>
    %2 = tpu.matmul %0, %1, %cst {dimension_numbers = #tpu.dot_dimension_numbers<[1], [0], [0], [1], [0, 0, 1, 1], [], []>} : vector<8x128xf32>, vector<128x128xf32>, vector<8x128xf32> -> vector<8x128xf32>
    %cst_3 = arith.constant 0.000000e+00 : f32
    %3 = vector.broadcast %cst_3 : f32 to vector<8x128xf32>
    %4 = arith.maximumf %2, %3 : vector<8x128xf32>
    %c0_4 = arith.constant 0 : index
    %c0_5 = arith.constant 0 : index
    %5 = vector.load %arg3[%c0_4, %c0_5] : memref<128x128xf32, #tpu.memory_space<vmem>>, vector<128x128xf32>
    %cst_6 = arith.constant dense<0.000000e+00> : vector<8x128xf32>
    %6 = tpu.matmul %4, %5, %cst_6 {dimension_numbers = #tpu.dot_dimension_numbers<[1], [0], [0], [1], [0, 0, 1, 1], [], []>} : vector<8x128xf32>, vector<128x128xf32>, vector<8x128xf32> -> vector<8x128xf32>
    %cst_7 = arith.constant 5.000000e-01 : f32
    %7 = vector.broadcast %cst_7 : f32 to vector<8x128xf32>
    %8 = arith.mulf %7, %6 : vector<8x128xf32>
    %9 = math.tanh %8 : vector<8x128xf32>
    %cst_8 = arith.constant 5.000000e-01 : f32
    %10 = vector.broadcast %cst_8 : f32 to vector<8x128xf32>
    %11 = arith.mulf %10, %9 : vector<8x128xf32>
    %cst_9 = arith.constant 5.000000e-01 : f32
    %12 = vector.broadcast %cst_9 : f32 to vector<8x128xf32>
    %13 = arith.addf %11, %12 : vector<8x128xf32>
    %c0_10 = arith.constant 0 : index
    %c0_11 = arith.constant 0 : index
    %14 = vector.load %arg1[%c0_10, %c0_11] : memref<8x128xf32, #tpu.memory_space<vmem>>, vector<8x128xf32>
    %15 = arith.mulf %14, %13 : vector<8x128xf32>
    %c0_12 = arith.constant 0 : index
    %c0_13 = arith.constant 0 : index
    %16 = vector.load %arg4[%c0_12, %c0_13] : memref<8x128xf32, #tpu.memory_space<vmem>>, vector<8x128xf32>
    tpu.vector_store %arg4[%c0_12, %c0_13], %15 {strides = array<i32>} : memref<8x128xf32, #tpu.memory_space<vmem>>, vector<8x128xf32>,
    return
  }
  func.func @transform_0(%arg0: i32) -> (i32, i32) {
    %c0_i32 = arith.constant 0 : i32
    %c0_i32_0 = arith.constant 0 : i32
    return %arg0, %c0_i32 : i32, i32
  }
  func.func @transform_1(%arg0: i32) -> (i32, i32) {
    %c0_i32 = arith.constant 0 : i32
    %c0_i32_0 = arith.constant 0 : i32
    %c0_i32_1 = arith.constant 0 : i32
    return %c0_i32, %c0_i32_0 : i32, i32
  }
  func.func @transform_2(%arg0: i32) -> (i32, i32) {
    %c0_i32 = arith.constant 0 : i32
    %c0_i32_0 = arith.constant 0 : i32
    %c0_i32_1 = arith.constant 0 : i32
    return %c0_i32, %c0_i32_0 : i32, i32
  }
  func.func @transform_3(%arg0: i32) -> (i32, i32) {
    %c0_i32 = arith.constant 0 : i32
    %c0_i32_0 = arith.constant 0 : i32
    return %arg0, %c0_i32 : i32, i32
  }
}

</mosaic_0001>

<bundles_post_ra>
// kernel: se_block.1
= control target key start
LH: loop header
LB: loop body
LE: loop exit
PB: predicated region body
PF: predicated region fallthrough
CT: control target
= control target key end

     0   :  { %v306_v0 = vmov 0.0   ;;  %vm307_vm0 = vmmov 0   ;;  %s464_s1 = inlined_call_operand.vmem [shape: f32[128,128], index: 1, kind: input, shape index: {}]   ;;  %s465_s2 = inlined_call_operand.vmem [shape: f32[128,128], index: 2, kind: input, shape index: {}]   ;;  %s466_s0 = inlined_call_operand.vmem [shape: f32[8,128], index: 0, kind: input, shape index: {}, may-alias: {0,3}]   ;;  %s467_s3 = inlined_call_operand.vmem [shape: f32[8,128], index: 3, kind: output, shape index: {}, may-alias: {0,3}]  }
   0x1   :  { %232 = vmatprep.subr.mxu0 %v306_v0  ;;  %v30_v1 = vld [vmem:[%s464_s1 + $0x78] sm:$0xff]  ;;  %v29_v2 = vld [vmem:[%s464_s1 + $0x70] sm:$0xff]  ;;  %264 = vmatprep.mubr.msk.f32.mxu0 %vm307_vm0, %v306_v0  ;;  %v28_v3 = vld [vmem:[%s464_s1 + $0x68] sm:$0xff] }
   0x2   :  { %233 = vmatpush3.msra.mxu0 %v30_v1  ;;  %267 = vmatprep.subr.mxu1 %v306_v0  ;;  %v27_v4 = vld [vmem:[%s464_s1 + $0x60] sm:$0xff]  ;;  %v117_v5 = vld [vmem:[%s465_s2 + $0x78] sm:$0xff]  ;;  %v116_v7 = vld [vmem:[%s465_s2 + $0x70] sm:$0xff] }
   0x3   :  { %234 = vmatprep.subr.mxu0 %v306_v0  ;;  %299 = vmatprep.mubr.msk.f32.mxu1 %vm307_vm0, %v306_v0  ;;  %v26_v6 = vld [vmem:[%s464_s1 + $0x58] sm:$0xff]  ;;  %v115_v8 = vld [vmem:[%s465_s2 + $0x68] sm:$0xff]  ;;  %v25_v9 = vld [vmem:[%s464_s1 + $0x50] sm:$0xff] }
   0x4   :  { %235 = vmatpush3.msra.mxu0 %v29_v2  ;;  %268 = vmatpush3.msra.mxu1 %v117_v5  ;;  %v114_v10 = vld [vmem:[%s465_s2 + $0x60] sm:$0xff]  ;;  %v24_v11 = vld [vmem:[%s464_s1 + $0x48] sm:$0xff]  ;;  %v113_v12 = vld [vmem:[%s465_s2 + $0x58] sm:$0xff] }
   0x5   :  { %236 = vmatprep.subr.mxu0 %v306_v0  ;;  %269 = vmatprep.subr.mxu1 %v306_v0  ;;  %v23_v13 = vld [vmem:[%s464_s1 + $0x40] sm:$0xff]  ;;  %v112_v14 = vld [vmem:[%s465_s2 + $0x50] sm:$0xff]  ;;  %v22_v15 = vld [vmem:[%s464_s1 + $0x38] sm:$0xff] }
   0x6   :  { %237 = vmatpush3.msra.mxu0 %v28_v3  ;;  %270 = vmatpush3.msra.mxu1 %v116_v7  ;;  %v111_v16 = vld [vmem:[%s465_s2 + $0x48] sm:$0xff]  ;;  %v21_v17 = vld [vmem:[%s464_s1 + $0x30] sm:$0xff]  ;;  %v110_v18 = vld [vmem:[%s465_s2 + $0x40] sm:$0xff] }
   0x7   :  { %238 = vmatprep.subr.mxu0 %v306_v0  ;;  %271 = vmatprep.subr.mxu1 %v306_v0  ;;  %v20_v19 = vld [vmem:[%s464_s1 + $0x28] sm:$0xff]  ;;  %v109_v20 = vld [vmem:[%s465_s2 + $0x38] sm:$0xff]  ;;  %v19_v21 = vld [vmem:[%s464_s1 + $0x20] sm:$0xff] }
   0x8   :  { %239 = vmatpush3.msra.mxu0 %v27_v4  ;;  %272 = vmatpush3.msra.mxu1 %v115_v8  ;;  %v108_v22 = vld [vmem:[%s465_s2 + $0x30] sm:$0xff]  ;;  %v18_v23 = vld [vmem:[%s464_s1 + $0x18] sm:$0xff]  ;;  %v107_v24 = vld [vmem:[%s465_s2 + $0x28] sm:$0xff] }
   0x9   :  { %240 = vmatprep.subr.mxu0 %v306_v0  ;;  %273 = vmatprep.subr.mxu1 %v306_v0  ;;  %v17_v25 = vld [vmem:[%s464_s1 + $0x10] sm:$0xff]  ;;  %v106_v26 = vld [vmem:[%s465_s2 + $0x20] sm:$0xff]  ;;  %v16_v27 = vld [vmem:[%s464_s1 + $0x8] sm:$0xff] }
   0xa   :  { %241 = vmatpush3.msra.mxu0 %v26_v6  ;;  %274 = vmatpush3.msra.mxu1 %v114_v10  ;;  %v105_v28 = vld [vmem:[%s465_s2 + $0x18] sm:$0xff]  ;;  %v15_v29 = vld [vmem:[%s464_s1] sm:$0xff]  ;;  %v104_v31 = vld [vmem:[%s465_s2 + $0x10] sm:$0xff] }
   0xb   :  { %242 = vmatprep.subr.mxu0 %v306_v0  ;;  %275 = vmatprep.subr.mxu1 %v306_v0  ;;  %v14_v30 = vld [vmem:[%s466_s0] sm:$0xff]  ;;  %v103_v32 = vld [vmem:[%s465_s2 + $0x8] sm:$0xff] }
   0xc   :  { %243 = vmatpush3.msra.mxu0 %v25_v9  ;;  %276 = vmatpush3.msra.mxu1 %v113_v12  ;;  %v102_v33 = vld [vmem:[%s465_s2] sm:$0xff] }
   0xd   :  { %244 = vmatprep.subr.mxu0 %v306_v0  ;;  %277 = vmatprep.subr.mxu1 %v306_v0 }
   0xe   :  { %245 = vmatpush3.msra.mxu0 %v24_v11  ;;  %278 = vmatpush3.msra.mxu1 %v112_v14 }
   0xf   :  { %246 = vmatprep.subr.mxu0 %v306_v0  ;;  %279 = vmatprep.subr.mxu1 %v306_v0 }
  0x10   :  { %247 = vmatpush3.msra.mxu0 %v23_v13  ;;  %280 = vmatpush3.msra.mxu1 %v111_v16 }
  0x11   :  { %248 = vmatprep.subr.mxu0 %v306_v0  ;;  %281 = vmatprep.subr.mxu1 %v306_v0 }
  0x12   :  { %249 = vmatpush3.msra.mxu0 %v22_v15  ;;  %282 = vmatpush3.msra.mxu1 %v110_v18 }
  0x13   :  { %250 = vmatprep.subr.mxu0 %v306_v0  ;;  %283 = vmatprep.subr.mxu1 %v306_v0 }
  0x14   :  { %251 = vmatpush3.msra.mxu0 %v21_v17  ;;  %284 = vmatpush3.msra.mxu1 %v109_v20 }
  0x15   :  { %252 = vmatprep.subr.mxu0 %v306_v0  ;;  %285 = vmatprep.subr.mxu1 %v306_v0 }
  0x16   :  { %253 = vmatpush3.msra.mxu0 %v20_v19  ;;  %286 = vmatpush3.msra.mxu1 %v108_v22 }
  0x17   :  { %254 = vmatprep.subr.mxu0 %v306_v0  ;;  %287 = vmatprep.subr.mxu1 %v306_v0 }
  0x18   :  { %255 = vmatpush3.msra.mxu0 %v19_v21  ;;  %288 = vmatpush3.msra.mxu1 %v107_v24 }
  0x19   :  { %256 = vmatprep.subr.mxu0 %v306_v0  ;;  %289 = vmatprep.subr.mxu1 %v306_v0 }
  0x1a   :  { %257 = vmatpush3.msra.mxu0 %v18_v23  ;;  %290 = vmatpush3.msra.mxu1 %v106_v26 }
  0x1b   :  { %258 = vmatprep.subr.mxu0 %v306_v0  ;;  %291 = vmatprep.subr.mxu1 %v306_v0 }
  0x1c   :  { %259 = vmatpush3.msra.mxu0 %v17_v25  ;;  %292 = vmatpush3.msra.mxu1 %v105_v28 }
  0x1d   :  { %260 = vmatprep.subr.mxu0 %v306_v0  ;;  %293 = vmatprep.subr.mxu1 %v306_v0 }
  0x1e   :  { %261 = vmatpush3.msra.mxu0 %v16_v27  ;;  %294 = vmatpush3.msra.mxu1 %v104_v31 }
  0x1f   :  { %262 = vmatprep.subr.mxu0 %v306_v0  ;;  %295 = vmatprep.subr.mxu1 %v306_v0 }
  0x20   :  { %263 = vmatpush3.msra.mxu0 %v15_v29  ;;  %296 = vmatpush3.msra.mxu1 %v103_v32 }
  0x21   :  { %265 = vmatmul.mubr.f32.vlgmr.msra.gmra.mxu0 %v14_v30  ;;  %297 = vmatprep.subr.mxu1 %v306_v0 }
  0x22   :  { %298 = vmatpush3.msra.mxu1 %v102_v33 }
  0xe1   :  { %v97_v34 = vpop.f32.mrf.mxu0 }
  0xe2   :  { %v101_v35 = vmax.f32 %v97_v34, 0.0 }
  0xe3   :  { %v266_v36 = vpop.f32.mrf.mxu0 }
  0xe4   :  { %300 = vmatmul.mubr.f32.vlgmr.msra.gmra.mxu1 %v101_v35 }
 0x1a4   :  { %v184_v37 = vpop.f32.mrf.mxu1 }
 0x1a5   :  { %v188_v38 = vmul.f32 0.5, %v184_v37 }
 0x1a6   :  { %v301_v39 = vpop.f32.mrf.mxu1 }
 0x1a7   :  { %304 = vtanh.f32 %v188_v38 }
 0x1b4   :  { %v305_v40 = vpop.eup %304 }
 0x1b5   :  { %v190_v41 = vmul.f32 0.5, %v305_v40 }
 0x1b7   :  { %v191_v42 = vadd.f32 0.5, %v190_v41 }
 0x1b9   :  { %v192_v43 = vmul.f32 %v191_v42, %v14_v30 }
 0x1bb   :  { %193 = vst [vmem:[%s467_s3] sm:$0xff] %v192_v43 }

</bundles_post_ra>
